<compile_context>
chip_gen: v7x
topology: tpu7x:2x2x1
jax: 0.10.0
libtpu: 0.0.40
codegen_flags: <defaults>
</compile_context>

<pallas_src>
import jax
import jax.numpy as jnp
from jax.experimental import pallas as pl
from jax.experimental.pallas import tpu as pltpu


def _make_kernel(B_TILE, F, H, W, Hp, Kdim):
    FW = F * W

    def kernel(x_ref, band_ref, b2_ref, out_ref):
        # x_ref   : (B_TILE, Hp, Kdim) VMEM  packed, H-padded input slab
        # band_ref: (Kdim, F*W)        VMEM  folded conv1*conv2 weights (concat bands)
        # b2_ref  : (1,)               SMEM  conv2 bias (scalar)
        # out_ref : (B_TILE, H, W)     VMEM  sigmoid(conv2(conv1(x)))
        rows = x_ref[...].reshape(B_TILE * Hp, Kdim)     # Hp % 8 == 0 -> free relayout
        # Single MXU matmul: (B_TILE*Hp, 256) x (256, 144), f32 accumulate.
        y = jnp.dot(rows, band_ref[...],
                    preferred_element_type=jnp.float32)  # (B_TILE*Hp, FW)
        y = y.reshape(B_TILE, Hp, FW)
        acc = jnp.zeros((B_TILE, H, W), jnp.float32)
        for ki in range(F):                  # fully unrolled: 9 static slice-adds
            acc = acc + y[:, ki:ki + H, ki * W:(ki + 1) * W]
        out_ref[...] = jax.nn.sigmoid(acc + b2_ref[0])   # bias from SMEM scalar

    return kernel


def _pick_b_tile(N, Hp):
    # Enough rows to fill a 128-deep MXU sublane pass (v5e weight-load
    # amortization), but keep >= 2 grid steps when N >= 2 so the batch shards
    # across both v7x TensorCores.
    bt_fill = pl.cdiv(128, Hp)
    bt_megacore = pl.cdiv(N, 2) if N >= 2 else 1
    return max(1, min(bt_fill, bt_megacore, N))


def simple3d_forward(x, dog_w, w2, b2):
    """Pallas implementation of Simple3DNetwork.forward (return_intermediate=False)."""
    N, C, D, H, W = x.shape
    C2, K, D2, F, F2 = dog_w.shape
    assert (C2, D2, F2) == (C, D, F)
    P = F // 2

    f32 = jnp.float32
    hi = jax.lax.Precision.HIGHEST

    CD = C * D
    Kraw = CD * W
    Kdim = ((Kraw + 127) // 128) * 128        # pad contraction dim to lane tiles
    kpad = Kdim - Kraw

    # ---- fold conv2 (1x1) into conv1 (exact; both stages linear):
    # weff[c,d,i,j] = sum_k dog_w[c,k,d,i,j] * w2[c,k]
    weff = jnp.einsum('ckdij,ck->cdij',
                      dog_w.astype(f32), w2.reshape(C, K).astype(f32),
                      precision=hi).reshape(CD, F, F)

    # ---- concatenated band matrix:
    # band[cd*W + w', i*W + w] = weff[cd, i, w' - w + P]
    # (entries with w'-w+P outside [0,F) are zero -> 'same' zero pad in W)
    j_ = jnp.arange(F)[:, None, None]
    wp_ = jnp.arange(W)[None, :, None]        # w' (input col within a plane)
    wo_ = jnp.arange(W)[None, None, :]        # w  (output col)
    shifts = (wp_ == wo_ + j_ - P).astype(f32)                    # (F, W, W)
    band = jnp.einsum('cij,jpw->cpiw', weff, shifts,
                      precision=hi)                               # (CD, W, F, W)
    band = band.reshape(Kraw, F * W)
    band = jnp.pad(band, ((0, kpad), (0, 0)))                     # (Kdim, F*W)

    # ---- pack the input: (N,C,D,H,W) -> (N, H, C*D*W); pad H by P (and align
    # padded H to a sublane multiple), pad K to Kdim, pad batch to B_TILE mult.
    Hp = H + 2 * P
    Hp_al = ((Hp + 7) // 8) * 8
    B_TILE = _pick_b_tile(N, Hp_al)
    NB = pl.cdiv(N, B_TILE) * B_TILE

    xt = jnp.transpose(x.astype(f32), (0, 3, 1, 2, 4)).reshape(N, H, Kraw)
    xt = jnp.pad(xt, ((0, NB - N), (P, Hp_al - H - P), (0, kpad)))  # (NB, Hp_al, Kdim)

    b2r = jnp.asarray(b2, f32).reshape(1,)

    kernel = _make_kernel(B_TILE, F, H, W, Hp_al, Kdim)
    out = pl.pallas_call(
        kernel,
        out_shape=jax.ShapeDtypeStruct((NB, H, W), f32),
        grid=(NB // B_TILE,),
        in_specs=[
            pl.BlockSpec((B_TILE, Hp_al, Kdim), lambda n: (n, 0, 0)),
            pl.BlockSpec((Kdim, F * W), lambda n: (0, 0)),   # grid-invariant weights
            pl.BlockSpec(memory_space=pltpu.MemorySpace.SMEM),
        ],
        out_specs=pl.BlockSpec((B_TILE, H, W), lambda n: (n, 0, 0)),
        compiler_params=pltpu.CompilerParams(
            dimension_semantics=("parallel",)),
    )(xt, band, b2r)

    return out[:N].reshape(N, 1, H, W), None   # matches (F.sigmoid(x), None)


def make_dog3d_filters(key, in_channels, k, depth, filter_size):
    """Deterministic synthetic DoG3DIsotropic filter bank.

    # TODO(synk): dognet's DoG3DIsotropic sigma parameterization is not
    # reproduced bit-for-bit (its source is not provided); this builds the
    # same structural filter: per output channel an isotropic 2D difference
    # of normalized Gaussians modulated by per-depth-slice weights.
    """
    ck = in_channels * k
    k1, k2, k3 = jax.random.split(key, 3)
    sigma1 = jax.random.uniform(k1, (ck,), minval=1.0, maxval=2.5)
    sigma2 = sigma1 * jax.random.uniform(k2, (ck,), minval=1.3, maxval=2.0)

    half = filter_size // 2
    coords = jnp.arange(filter_size, dtype=jnp.float32) - half
    yv, xv = jnp.meshgrid(coords, coords, indexing="ij")
    r2 = xv ** 2 + yv ** 2

    def norm_gauss(sig):
        g = jnp.exp(-r2[None, :, :] / (2.0 * sig[:, None, None] ** 2))
        return g / jnp.sum(g, axis=(1, 2), keepdims=True)

    dog2d = norm_gauss(sigma1) - norm_gauss(sigma2)               # (ck, F, F)
    depth_w = jax.random.uniform(k3, (ck, depth), minval=0.5, maxval=1.0)
    dog3d = depth_w[:, :, None, None] * dog2d[:, None, :, :]      # (ck, D, F, F)
    return dog3d.reshape(in_channels, k, depth, filter_size, filter_size)


def reference_forward(x, dog_w, w2, b2):
    """Pure-JAX reference (mirrors the PyTorch forward) for correctness check."""
    N, C, D, H, W = x.shape
    _, K, _, F, _ = dog_w.shape
    P = F // 2
    w3 = dog_w.reshape(C * K, 1, D, F, F)
    y = jax.lax.conv_general_dilated(
        x, w3,
        window_strides=(1, 1, 1),
        padding=((0, 0), (P, P), (P, P)),
        dimension_numbers=("NCDHW", "OIDHW", "NCDHW"),
        feature_group_count=C,
        precision=jax.lax.Precision.HIGHEST)
    y = y[:, :, 0]                                   # == y.squeeze(2)
    z = jnp.einsum("nchw,c->nhw", y, w2.reshape(C * K),
                   precision=jax.lax.Precision.HIGHEST) + b2
    return jax.nn.sigmoid(z)[:, None, :, :]


if __name__ == "__main__":
    # Shapes consistent with the module: in_channels=4, filter_size=9, k=4,
    # depth=3, batch=2, spatial 16x16.
    N, C, D, H, W = 2, 4, 3, 16, 16
    K, F = 4, 9

    key = jax.random.PRNGKey(0)
    kx, kf, kw, kb = jax.random.split(key, 4)

    x = jax.random.normal(kx, (N, C, D, H, W), dtype=jnp.float32)
    dog_w = make_dog3d_filters(kf, C, K, D, F)                 # (C, K, D, F, F)
    w2 = jax.random.normal(kw, (C * K,), dtype=jnp.float32) * 0.5
    b2 = jax.random.normal(kb, (), dtype=jnp.float32) * 0.1

    probs, intermediate = simple3d_forward(x, dog_w, w2, b2)
    probs = jax.block_until_ready(probs)

    ref = reference_forward(x, dog_w, w2, b2)
    assert probs.shape == (N, 1, H, W)
    assert intermediate is None
    max_err = float(jnp.max(jnp.abs(probs - ref)))
    # The conv2 fold is exact (HIGHEST-precision wrapper einsums); residual
    # error is the in-kernel default-precision f32 MXU matmul rounding.
    assert max_err < 2e-3, max_err

    print("KERNEL_OK")
</pallas_src>

<mosaic_0001>
module attributes {stable_mosaic.version = 11 : i64} {
  func.func @kernel(%arg0: i32, %arg1: memref<1x24x256xf32, #tpu.memory_space<vmem>>, %arg2: memref<256x144xf32, #tpu.memory_space<vmem>>, %arg3: memref<1xf32, #tpu.memory_space<smem>>, %arg4: memref<1x16x16xf32, #tpu.memory_space<vmem>>) attributes {dimension_semantics = [#tpu.dimension_semantics<parallel>], iteration_bounds = array<i64: 2>, scalar_prefetch = 0 : i64, scratch_operands = 0 : i64, tpu.core_type = #tpu.core_type<tc>, window_params = [{transform_indices = @transform_0, window_bounds = array<i64: 1, 24, 256>}, {pipeline_mode = #tpu.pipeline_mode<synchronous>, transform_indices = @transform_1, window_bounds = array<i64: 256, 144>}, {transform_indices = @transform_2, window_bounds = array<i64: 1>}, {transform_indices = @transform_3, window_bounds = array<i64: 1, 16, 16>}]} {
    %c0 = arith.constant 0 : index
    %c0_0 = arith.constant 0 : index
    %c0_1 = arith.constant 0 : index
    %0 = vector.load %arg1[%c0, %c0_0, %c0_1] : memref<1x24x256xf32, #tpu.memory_space<vmem>>, vector<1x24x256xf32>
    %1 = vector.shape_cast %0 : vector<1x24x256xf32> to vector<24x256xf32>
    %c0_2 = arith.constant 0 : index
    %c0_3 = arith.constant 0 : index
    %2 = vector.load %arg2[%c0_2, %c0_3] : memref<256x144xf32, #tpu.memory_space<vmem>>, vector<256x144xf32>
    %cst = arith.constant dense<0.000000e+00> : vector<24x144xf32>
    %3 = tpu.matmul %1, %2, %cst {dimension_numbers = #tpu.dot_dimension_numbers<[1], [0], [0], [1], [0, 0, 1, 1], [], []>} : vector<24x256xf32>, vector<256x144xf32>, vector<24x144xf32> -> vector<24x144xf32>
    %4 = vector.shape_cast %3 : vector<24x144xf32> to vector<1x24x144xf32>
    %cst_4 = arith.constant 0.000000e+00 : f32
    %5 = vector.broadcast %cst_4 : f32 to vector<1x16x16xf32>
    %6 = vector.extract_strided_slice %4 {offsets = [0, 0, 0], sizes = [1, 16, 16], strides = [1, 1, 1]} : vector<1x24x144xf32> to vector<1x16x16xf32>
    %7 = arith.addf %5, %6 : vector<1x16x16xf32>
    %8 = vector.extract_strided_slice %4 {offsets = [0, 1, 16], sizes = [1, 16, 16], strides = [1, 1, 1]} : vector<1x24x144xf32> to vector<1x16x16xf32>
    %9 = arith.addf %7, %8 : vector<1x16x16xf32>
    %10 = vector.extract_strided_slice %4 {offsets = [0, 2, 32], sizes = [1, 16, 16], strides = [1, 1, 1]} : vector<1x24x144xf32> to vector<1x16x16xf32>
    %11 = arith.addf %9, %10 : vector<1x16x16xf32>
    %12 = vector.extract_strided_slice %4 {offsets = [0, 3, 48], sizes = [1, 16, 16], strides = [1, 1, 1]} : vector<1x24x144xf32> to vector<1x16x16xf32>
    %13 = arith.addf %11, %12 : vector<1x16x16xf32>
    %14 = vector.extract_strided_slice %4 {offsets = [0, 4, 64], sizes = [1, 16, 16], strides = [1, 1, 1]} : vector<1x24x144xf32> to vector<1x16x16xf32>
    %15 = arith.addf %13, %14 : vector<1x16x16xf32>
    %16 = vector.extract_strided_slice %4 {offsets = [0, 5, 80], sizes = [1, 16, 16], strides = [1, 1, 1]} : vector<1x24x144xf32> to vector<1x16x16xf32>
    %17 = arith.addf %15, %16 : vector<1x16x16xf32>
    %18 = vector.extract_strided_slice %4 {offsets = [0, 6, 96], sizes = [1, 16, 16], strides = [1, 1, 1]} : vector<1x24x144xf32> to vector<1x16x16xf32>
    %19 = arith.addf %17, %18 : vector<1x16x16xf32>
    %20 = vector.extract_strided_slice %4 {offsets = [0, 7, 112], sizes = [1, 16, 16], strides = [1, 1, 1]} : vector<1x24x144xf32> to vector<1x16x16xf32>
    %21 = arith.addf %19, %20 : vector<1x16x16xf32>
    %22 = vector.extract_strided_slice %4 {offsets = [0, 8, 128], sizes = [1, 16, 16], strides = [1, 1, 1]} : vector<1x24x144xf32> to vector<1x16x16xf32>
    %23 = arith.addf %21, %22 : vector<1x16x16xf32>
    %c0_5 = arith.constant 0 : index
    %24 = memref.load %arg3[%c0_5] : memref<1xf32, #tpu.memory_space<smem>>
    %25 = vector.broadcast %24 : f32 to vector<1x16x16xf32>
    %26 = arith.addf %23, %25 : vector<1x16x16xf32>
    %27 = arith.negf %26 : vector<1x16x16xf32>
    %28 = math.exp %27 : vector<1x16x16xf32>
    %cst_6 = arith.constant 1.000000e+00 : f32
    %29 = vector.broadcast %cst_6 : f32 to vector<1x16x16xf32>
    %30 = arith.addf %29, %28 : vector<1x16x16xf32>
    %31 = arith.divf %29, %30 : vector<1x16x16xf32>
    %c0_7 = arith.constant 0 : index
    %c0_8 = arith.constant 0 : index
    %c0_9 = arith.constant 0 : index
    %32 = vector.load %arg4[%c0_7, %c0_8, %c0_9] : memref<1x16x16xf32, #tpu.memory_space<vmem>>, vector<1x16x16xf32>
    tpu.vector_store %arg4[%c0_7, %c0_8, %c0_9], %31 {strides = array<i32>} : memref<1x16x16xf32, #tpu.memory_space<vmem>>, vector<1x16x16xf32>,
    return
  }
  func.func @transform_0(%arg0: i32) -> (i32, i32, i32) {
    %c0_i32 = arith.constant 0 : i32
    %c0_i32_0 = arith.constant 0 : i32
    %c0_i32_1 = arith.constant 0 : i32
    return %arg0, %c0_i32, %c0_i32_0 : i32, i32, i32
  }
  func.func @transform_1(%arg0: i32) -> (i32, i32) {
    %c0_i32 = arith.constant 0 : i32
    %c0_i32_0 = arith.constant 0 : i32
    %c0_i32_1 = arith.constant 0 : i32
    return %c0_i32, %c0_i32_0 : i32, i32
  }
  func.func @transform_2(%arg0: i32) -> i32 {
    %c0_i32 = arith.constant 0 : i32
    %c0_i32_0 = arith.constant 0 : i32
    return %c0_i32 : i32
  }
  func.func @transform_3(%arg0: i32) -> (i32, i32, i32) {
    %c0_i32 = arith.constant 0 : i32
    %c0_i32_0 = arith.constant 0 : i32
    %c0_i32_1 = arith.constant 0 : i32
    return %arg0, %c0_i32, %c0_i32_0 : i32, i32, i32
  }
}

</mosaic_0001>

<bundles_post_ra>
// kernel: tpu_custom_call.1
= control target key start
LH: loop header
LB: loop body
LE: loop exit
PB: predicated region body
PF: predicated region fallthrough
CT: control target
= control target key end

     0   :  { %s1131_s0 = inlined_call_operand.vmem [shape: f32[2,24,256], index: 0, kind: input, shape index: {}]   ;;  %s1132_s1 = inlined_call_operand.vmem [shape: f32[256,144], index: 1, kind: input, shape index: {}]   ;;  %s1133_s2 = inlined_call_operand.<no memory space> [shape: f32[1], index: 2, kind: input, shape index: {}]   ;;  %s1134_s3 = inlined_call_operand.hbm [shape: f32[2,16,16], index: 3, kind: output, shape index: {}]  }
   0x1   :  { %8 = sst [smem:[#allocation2]] %s1133_s2 }
   0x2   :  { %9 = vsyncpa [#allocation4], 0 }
   0x3   :  { %11 = vsyncpa [#allocation4 + $0x1], 0  ;;  %s786_s14 = smov 0   ;;  %s788_s15 = smov 0  }
   0x4   :  { %s790_s16 = smov 0   ;;  %s792_s17 = smov 0  }
   0x5 LB: > { %s807_s2 = sadd.s32 4294967295, %s751_s17   ;;  %s522_s18 = sadd.s32 4294967294, %s751_s17   ;;  %s751_s17 = sphi %s792_s17, %s1140_s17   ;;  %s747_s16 = sphi %s790_s16, %s1139_s16   ;;  %s743_s15 = sphi %s788_s15, %s1138_s15   ;;  %s739_s14 = sphi %s786_s14, %s1137_s14  }
   0x6   : > { %s811_s19 = sadd.s32 1, %s751_s17   ;;  %s92_s20 = sadd.s32 1, %s747_s16 }
   0x7   : > { %s89_s21 = ssub.s32 %s751_s17, %s811_s19  ;;  %p102_p0 = scmp.ne.s32.totalorder %s747_s16, %s743_s15 }
   0x8   : > { %p90_p1 = scmp.eq.s32.totalorder %s89_s21, 0  ;;  %p103_p2 = scmp.eq.s32.totalorder %s807_s2, 1 }
   0x9   : > { %p108_p3 = scmp.ne.s32.totalorder %s743_s15, %s739_s14  ;;  %p109_p4 = scmp.eq.s32.totalorder %s522_s18, 1 }
   0xa   : > { %s822_s22 = scalar_select %p90_p1, %s747_s16, %s92_s20  }
   0xb   : > { %p824_p5 = por %p103_p2, %p102_p0  ;;  %p828_p6 = por %p109_p4, %p108_p3 }
   0xc   : > { %p525_p7 = scmp.ge.s32.totalorder %s751_s17, 1  ;;  %p141_p8 = scmp.lt.s32.totalorder %s751_s17, 3 }
   0xe   : > { %p142_p9 = pnand %p525_p7, %p141_p8 }
   0xf   : > { %v177_v0 = vld [vmem:[%s1132_s1 + $0x8] sm:$0xff] (!%p142_p9)  ;;  %v179_v1 = vld [vmem:[%s1132_s1 + $0x18] sm:$0xff] (!%p142_p9)  ;;  %v176_v2 = vld [vmem:[%s1132_s1] sm:$0xff] (!%p142_p9)  ;;  %p165_p10 = scmp.lt.s32.totalorder (!%p142_p9), %s807_s2, 1  ;;  %vm341_vm0 = vcmask (!%p142_p9), 1045504   ;;  %vm327_vm1 = vcmask (!%p142_p9), 1046528  }
  0x10   : > { %145 = sbr.rel (%p142_p9) target bundleno = 484 (0x1e4), region = 32  ;;  %v536_v3 = vpack.c.bf16 (!%p142_p9), %v179_v1, %v177_v0  ;;  %v178_v4 = vld [vmem:[%s1132_s1 + $0x10] sm:$0xff] (!%p142_p9)  ;;  %v181_v5 = vld [vmem:[%s1132_s1 + $0x28] sm:$0xff] (!%p142_p9)  ;;  %v183_v6 = vld [vmem:[%s1132_s1 + $0x38] sm:$0xff] (!%p142_p9)  ;;  %vm355_vm2 = vcmask (!%p142_p9), 1044480   ;;  %vm369_vm3 = vcmask (!%p142_p9), 1043456  }
  0x11   : > { %v538_v7 = vpack.c.bf16 (!%p142_p9), %v178_v4, %v176_v2  ;;  %v540_v8 = vpack.c.bf16 (!%p142_p9), %v183_v6, %v181_v5  ;;  %v180_v9 = vld [vmem:[%s1132_s1 + $0x20] sm:$0xff] (!%p142_p9)  ;;  %v182_v10 = vld [vmem:[%s1132_s1 + $0x30] sm:$0xff] (!%p142_p9)  ;;  %v185_v11 = vld [vmem:[%s1132_s1 + $0x48] sm:$0xff] (!%p142_p9)  ;;  %vm383_vm4 = vcmask (!%p142_p9), 1042432   ;;  %vm397_vm5 = vcmask (!%p142_p9), 1041408   ;;  %s754_s29 = smov (!%p142_p9), 112  }
  0x12   : > { %537 = vmatprep.subr.bf16.mxu0 (!%p142_p9), %v536_v3  ;;  %600 = vmatprep.subr.bf16.mxu1 (!%p142_p9), %v536_v3  ;;  %v187_v12 = vld [vmem:[%s1132_s1 + $0x58] sm:$0xff] (!%p142_p9)  ;;  %v542_v13 = vpack.c.bf16 (!%p142_p9), %v182_v10, %v180_v9  ;;  %v184_v15 = vld [vmem:[%s1132_s1 + $0x40] sm:$0xff] (!%p142_p9)  ;;  %v186_v16 = vld [vmem:[%s1132_s1 + $0x50] sm:$0xff] (!%p142_p9)  ;;  %vm411_vm6 = vcmask (!%p142_p9), 1040384   ;;  %s755_s30 = smov (!%p142_p9), 80   ;;  %s756_s4 = smov (!%p142_p9), 64  }
  0x13   : > { %539 = vmatpush1.bf16.msra.mxu0 (!%p142_p9), %v538_v7  ;;  %616 = vmatpush1.bf16.msra.mxu1 (!%p142_p9), %v538_v7  ;;  %v544_v14 = vpack.c.bf16 (!%p142_p9), %v187_v12, %v185_v11  ;;  %v189_v17 = vld [vmem:[%s1132_s1 + $0x68] sm:$0xff] (!%p142_p9)  ;;  %v191_v18 = vld [vmem:[%s1132_s1 + $0x78] sm:$0xff] (!%p142_p9)  ;;  %v546_v19 = vpack.c.bf16 (!%p142_p9), %v186_v16, %v184_v15  ;;  %v188_v21 = vld [vmem:[%s1132_s1 + $0x60] sm:$0xff] (!%p142_p9)  ;;  %s758_s6 = smov (!%p142_p9), 32   ;;  %s759_s7 = smov (!%p142_p9), 16   ;;  %vm443_vm7 = vcmask (!%p142_p9), 130048  }
  0x14   : > { %541 = vmatprep.subr.bf16.mxu0 (!%p142_p9), %v540_v8  ;;  %601 = vmatprep.subr.bf16.mxu1 (!%p142_p9), %v540_v8  ;;  %v548_v20 = vpack.c.bf16 (!%p142_p9), %v191_v18, %v189_v17  ;;  %v190_v22 = vld [vmem:[%s1132_s1 + $0x70] sm:$0xff] (!%p142_p9)  ;;  %v193_v23 = vld [vmem:[%s1132_s1 + $0x88] sm:$0xff] (!%p142_p9)  ;;  %v195_v24 = vld [vmem:[%s1132_s1 + $0x98] sm:$0xff] (!%p142_p9)  ;;  %s427_s8 = sld [smem:[#allocation2]] (!%p142_p9)  ;;  %s162_s9 = sand.u32 (!%p142_p9), 1, %s743_s15  }
  0x15   : > { %v550_v25 = vpack.c.bf16 (!%p142_p9), %v190_v22, %v188_v21  ;;  %v552_v26 = vpack.c.bf16 (!%p142_p9), %v195_v24, %v193_v23  ;;  %v192_v27 = vld [vmem:[%s1132_s1 + $0x80] sm:$0xff] (!%p142_p9)  ;;  %v194_v28 = vld [vmem:[%s1132_s1 + $0x90] sm:$0xff] (!%p142_p9)  ;;  %v197_v29 = vld [vmem:[%s1132_s1 + $0xa8] sm:$0xff] (!%p142_p9)  ;;  %s526_s10 = sshll.u32 (!%p142_p9), %s162_s9, 4  ;;  %s535_s11 = sshll.u32 (!%p142_p9), %s807_s2, 8 }
  0x16   : > { %v199_v30 = vld [vmem:[%s1132_s1 + $0xb8] sm:$0xff] (!%p142_p9)  ;;  %v554_v31 = vpack.c.bf16 (!%p142_p9), %v194_v28, %v192_v27  ;;  %v196_v33 = vld [vmem:[%s1132_s1 + $0xa0] sm:$0xff] (!%p142_p9)  ;;  %v198_v34 = vld [vmem:[%s1132_s1 + $0xb0] sm:$0xff] (!%p142_p9)  ;;  %s164_s12 = scalar_lea.vmem (!%p142_p9), [#allocation3], %s526_s10  ;;  %s1086_s25 = scalar_lea.hbm (!%p142_p9), %s1134_s3, %s535_s11 }
  0x17   : > { %543 = vmatpush1.bf16.msra.mxu0 %v542_v13  ;;  %617 = vmatpush1.bf16.msra.mxu1 %v542_v13  ;;  %s166_s20 = scalar_select %p165_p10, %s807_s2, 1  ;;  %v556_v32 = vpack.c.bf16 %v199_v30, %v197_v29  ;;  %v201_v35 = vld [vmem:[%s1132_s1 + $0xc8] sm:$0xff]  ;;  %v203_v36 = vld [vmem:[%s1132_s1 + $0xd8] sm:$0xff]  ;;  %v558_v37 = vpack.c.bf16 %v198_v34, %v196_v33  ;;  %v200_v38 = vld [vmem:[%s1132_s1 + $0xc0] sm:$0xff] }
  0x18   : > { %545 = vmatprep.subr.bf16.mxu0 %v544_v14  ;;  %602 = vmatprep.subr.bf16.mxu1 %v544_v14  ;;  %v560_v39 = vpack.c.bf16 %v203_v36, %v201_v35  ;;  %v202_v40 = vld [vmem:[%s1132_s1 + $0xd0] sm:$0xff]  ;;  %v205_v43 = vld [vmem:[%s1132_s1 + $0xe8] sm:$0xff]  ;;  %v207_v44 = vld [vmem:[%s1132_s1 + $0xf8] sm:$0xff]  ;;  %s460_s13 = sshll.u32 %s164_s12, 4  ;;  %s1090_s26 = scalar_lea.sflag [#allocation4], %s162_s9  ;;  %s1088_s13 = int_to_ptr.vmem [resolvable:$true] %s460_s13 }
  0x19   : > { %s632_s5 = smul.u32 48, %s166_s20  ;;  %v562_v45 = vpack.c.bf16 %v202_v40, %v200_v38  ;;  %v564_v46 = vpack.c.bf16 %v207_v44, %v205_v43  ;;  %v204_v47 = vld [vmem:[%s1132_s1 + $0xe0] sm:$0xff]  ;;  %v206_v48 = vld [vmem:[%s1132_s1 + $0xf0] sm:$0xff]  ;;  %v209_v49 = vld [vmem:[%s1132_s1 + $0x108] sm:$0xff]  ;;  %s689_s2 = scalar_lea.vmem %s1088_s13, 256 }
  0x1a   : > { %v211_v50 = vld [vmem:[%s1132_s1 + $0x118] sm:$0xff]  ;;  %v566_v51 = vpack.c.bf16 %v206_v48, %v204_v47  ;;  %v208_v53 = vld [vmem:[%s1132_s1 + $0x100] sm:$0xff]  ;;  %v210_v54 = vld [vmem:[%s1132_s1 + $0x110] sm:$0xff]  ;;  %p690_p11 = scmp.ne.s32.totalorder %s1088_s13, %s689_s2  ;;  %s760_s27 = smov [#allocation3]  }
  0x1b   : > { %547 = vmatpush1.bf16.msra.mxu0 %v546_v19  ;;  %618 = vmatpush1.bf16.msra.mxu1 %v546_v19  ;;  %s917_s21 = scalar_lea.vmem %s1131_s0, %s632_s5  ;;  %v568_v52 = vpack.c.bf16 %v211_v50, %v209_v49  ;;  %v213_v55 = vld [vmem:[%s1132_s1 + $0x128] sm:$0xff]  ;;  %v215_v56 = vld [vmem:[%s1132_s1 + $0x138] sm:$0xff]  ;;  %v570_v57 = vpack.c.bf16 %v210_v54, %v208_v53  ;;  %v212_v59 = vld [vmem:[%s1132_s1 + $0x120] sm:$0xff]  ;;  %s757_s5 = smov 48  }
  0x1c   : > { %549 = vmatprep.subr.bf16.mxu0 %v548_v20  ;;  %603 = vmatprep.subr.bf16.mxu1 %v548_v20  ;;  %v171_v41 = vld [vmem:[%s917_s21 + $0x8] sm:$0xff]  ;;  %v173_v42 = vld [vmem:[%s917_s21 + $0x18] sm:$0xff]  ;;  %v572_v58 = vpack.c.bf16 %v215_v56, %v213_v55  ;;  %v214_v60 = vld [vmem:[%s1132_s1 + $0x130] sm:$0xff]  ;;  %p691_p12 = pnand %p690_p11, %p824_p5  ;;  %s693_s28 = sshll.u32 %s760_s27, 4  ;;  %s694_s28 = int_to_ptr.vmem [resolvable:$false] %s693_s28 }
  0x1d   : > { %304 = vmatprep.mubr.f32.mxu0 %v171_v41  ;;  %309 = vmatprep.mubr.f32.mxu1 %v173_v42  ;;  %v217_v61 = vld [vmem:[%s1132_s1 + $0x148] sm:$0xff]  ;;  %v219_v62 = vld [vmem:[%s1132_s1 + $0x158] sm:$0xff]  ;;  %v574_v63 = vpack.c.bf16 %v214_v60, %v212_v59  ;;  %v216_v1 = vld [vmem:[%s1132_s1 + $0x140] sm:$0xff]  ;;  %p696_p0 = scmp.lt.s32.totalorder %s1088_s13, %s694_s28 }
  0x1e   : > { %v576_v0 = vpack.c.bf16 %v219_v62, %v217_v61  ;;  %v218_v2 = vld [vmem:[%s1132_s1 + $0x150] sm:$0xff]  ;;  %v221_v3 = vld [vmem:[%s1132_s1 + $0x168] sm:$0xff]  ;;  %v223_v4 = vld [vmem:[%s1132_s1 + $0x178] sm:$0xff]  ;;  %p692_p13 = pneg %p691_p12 }
  0x1f   : > { %551 = vmatpush1.bf16.msra.mxu0 %v550_v25  ;;  %619 = vmatpush1.bf16.msra.mxu1 %v550_v25  ;;  %v578_v5 = vpack.c.bf16 %v218_v2, %v216_v1  ;;  %v580_v6 = vpack.c.bf16 %v223_v4, %v221_v3  ;;  %v220_v7 = vld [vmem:[%s1132_s1 + $0x160] sm:$0xff]  ;;  %v222_v8 = vld [vmem:[%s1132_s1 + $0x170] sm:$0xff]  ;;  %v225_v9 = vld [vmem:[%s1132_s1 + $0x188] sm:$0xff] }
  0x20   : > { %553 = vmatprep.subr.bf16.mxu0 %v552_v26  ;;  %604 = vmatprep.subr.bf16.mxu1 %v552_v26  ;;  %v227_v10 = vld [vmem:[%s1132_s1 + $0x198] sm:$0xff]  ;;  %v582_v11 = vpack.c.bf16 %v222_v8, %v220_v7  ;;  %v224_v13 = vld [vmem:[%s1132_s1 + $0x180] sm:$0xff]  ;;  %v226_v14 = vld [vmem:[%s1132_s1 + $0x190] sm:$0xff] }
  0x21   : > { %v584_v12 = vpack.c.bf16 %v227_v10, %v225_v9  ;;  %v229_v15 = vld [vmem:[%s1132_s1 + $0x1a8] sm:$0xff]  ;;  %v231_v16 = vld [vmem:[%s1132_s1 + $0x1b8] sm:$0xff]  ;;  %v586_v17 = vpack.c.bf16 %v226_v14, %v224_v13  ;;  %v228_v19 = vld [vmem:[%s1132_s1 + $0x1a0] sm:$0xff] }
  0x22   : > { %v588_v18 = vpack.c.bf16 %v231_v16, %v229_v15  ;;  %v230_v20 = vld [vmem:[%s1132_s1 + $0x1b0] sm:$0xff]  ;;  %v233_v21 = vld [vmem:[%s1132_s1 + $0x1c8] sm:$0xff]  ;;  %v235_v22 = vld [vmem:[%s1132_s1 + $0x1d8] sm:$0xff] }
  0x23   : > { %555 = vmatpush1.bf16.msra.mxu0 %v554_v31  ;;  %620 = vmatpush1.bf16.msra.mxu1 %v554_v31  ;;  %v590_v23 = vpack.c.bf16 %v230_v20, %v228_v19  ;;  %v592_v24 = vpack.c.bf16 %v235_v22, %v233_v21  ;;  %v232_v25 = vld [vmem:[%s1132_s1 + $0x1c0] sm:$0xff]  ;;  %v234_v26 = vld [vmem:[%s1132_s1 + $0x1d0] sm:$0xff]  ;;  %v237_v27 = vld [vmem:[%s1132_s1 + $0x1e8] sm:$0xff] }
  0x24   : > { %557 = vmatprep.subr.bf16.mxu0 %v556_v32  ;;  %605 = vmatprep.subr.bf16.mxu1 %v556_v32  ;;  %v239_v28 = vld [vmem:[%s1132_s1 + $0x1f8] sm:$0xff]  ;;  %v594_v29 = vpack.c.bf16 %v234_v26, %v232_v25  ;;  %v236_v31 = vld [vmem:[%s1132_s1 + $0x1e0] sm:$0xff]  ;;  %v238_v32 = vld [vmem:[%s1132_s1 + $0x1f0] sm:$0xff] }
  0x25   : > { %v596_v30 = vpack.c.bf16 %v239_v28, %v237_v27  ;;  %v598_v33 = vpack.c.bf16 %v238_v32, %v236_v31  ;;  %v170_v34 = vld [vmem:[%s917_s21] sm:$0xff]  ;;  %v172_v35 = vld [vmem:[%s917_s21 + $0x10] sm:$0xff]  ;;  %v175_v36 = vld [vmem:[%s917_s21 + $0x28] sm:$0xff] }
  0x27   : > { %559 = vmatpush1.bf16.msra.mxu0 %v558_v37  ;;  %621 = vmatpush1.bf16.msra.mxu1 %v558_v37  ;;  %v174_v37 = vld [vmem:[%s917_s21 + $0x20] sm:$0xff]  ;;  %s753_s21 = smov 96  }
  0x28   : > { %561 = vmatprep.subr.bf16.mxu0 %v560_v39  ;;  %606 = vmatprep.subr.bf16.mxu1 %v560_v39 }
  0x2b   : > { %563 = vmatpush1.bf16.msra.mxu0 %v562_v45  ;;  %622 = vmatpush1.bf16.msra.mxu1 %v562_v45 }
  0x2c   : > { %565 = vmatprep.subr.bf16.mxu0 %v564_v46  ;;  %607 = vmatprep.subr.bf16.mxu1 %v564_v46 }
  0x2f   : > { %567 = vmatpush1.bf16.msra.mxu0 %v566_v51  ;;  %623 = vmatpush1.bf16.msra.mxu1 %v566_v51 }
  0x30   : > { %569 = vmatprep.subr.bf16.mxu0 %v568_v52  ;;  %608 = vmatprep.subr.bf16.mxu1 %v568_v52 }
  0x33   : > { %571 = vmatpush1.bf16.msra.mxu0 %v570_v57  ;;  %624 = vmatpush1.bf16.msra.mxu1 %v570_v57 }
  0x34   : > { %573 = vmatprep.subr.bf16.mxu0 %v572_v58  ;;  %609 = vmatprep.subr.bf16.mxu1 %v572_v58 }
  0x37   : > { %575 = vmatpush1.bf16.msra.mxu0 %v574_v63  ;;  %625 = vmatpush1.bf16.msra.mxu1 %v574_v63 }
  0x38   : > { %577 = vmatprep.subr.bf16.mxu0 %v576_v0  ;;  %610 = vmatprep.subr.bf16.mxu1 %v576_v0 }
  0x3b   : > { %579 = vmatpush1.bf16.msra.mxu0 %v578_v5  ;;  %626 = vmatpush1.bf16.msra.mxu1 %v578_v5 }
  0x3c   : > { %581 = vmatprep.subr.bf16.mxu0 %v580_v6  ;;  %611 = vmatprep.subr.bf16.mxu1 %v580_v6 }
  0x3f   : > { %583 = vmatpush1.bf16.msra.mxu0 %v582_v11  ;;  %627 = vmatpush1.bf16.msra.mxu1 %v582_v11 }
  0x40   : > { %585 = vmatprep.subr.bf16.mxu0 %v584_v12  ;;  %612 = vmatprep.subr.bf16.mxu1 %v584_v12 }
  0x43   : > { %587 = vmatpush1.bf16.msra.mxu0 %v586_v17  ;;  %628 = vmatpush1.bf16.msra.mxu1 %v586_v17 }
  0x44   : > { %589 = vmatprep.subr.bf16.mxu0 %v588_v18  ;;  %613 = vmatprep.subr.bf16.mxu1 %v588_v18 }
  0x47   : > { %591 = vmatpush1.bf16.msra.mxu0 %v590_v23  ;;  %629 = vmatpush1.bf16.msra.mxu1 %v590_v23 }
  0x48   : > { %593 = vmatprep.subr.bf16.mxu0 %v592_v24  ;;  %614 = vmatprep.subr.bf16.mxu1 %v592_v24 }
  0x4b   : > { %595 = vmatpush1.bf16.msra.mxu0 %v594_v29  ;;  %630 = vmatpush1.bf16.msra.mxu1 %v594_v29 }
  0x4c   : > { %597 = vmatprep.subr.bf16.mxu0 %v596_v30  ;;  %615 = vmatprep.subr.bf16.mxu1 %v596_v30 }
  0x4f   : > { %599 = vmatpush1.bf16.msra.mxu0 %v598_v33  ;;  %631 = vmatpush1.bf16.msra.mxu1 %v598_v33 }
  0x52   : > { %305 = vmatmul.mubr.f32.vlgmr.msra.gmra.mrb[0].mxu0 %v170_v34  ;;  %310 = vmatmul.mubr.f32.vlgmr.msra.gmra.mrb[0].mxu1 %v172_v35 }
  0x53   : > { %315 = vmatprep.mubr.f32.mxu1 %v175_v36 }
  0x56   : > { %316 = vmatmul.mubr.f32.gmra.mrb[2].mxu1 %v174_v37 }
 0x125   : > { %v1039_v38 = vpop.f32.mrb[0].mxu0  ;;  %v1041_v39 = vpop.f32.mrb[0].mxu1 }
 0x126   : > { %v308_v40 = vpop.f32.mrb[1].mxu0  ;;  %v1043_v41 = vpop.f32.mrb[1].mxu1  ;;  %v342_v42 = vrot.slane %v1039_v38, 2  ;;  %v343_v43 = vrot.slane %v1041_v39, 2  ;;  %v328_v44 = vrot.slane %v1039_v38, 1  ;;  %v329_v45 = vrot.slane %v1041_v39, 1 }
 0x127   : > { %v356_v46 = vrot.slane %v1039_v38, 3  ;;  %v357_v47 = vrot.slane %v1041_v39, 3  ;;  %v370_v48 = vrot.slane %v1039_v38, 4  ;;  %v371_v49 = vrot.slane %v1041_v39, 4 }
 0x128   : > { %v344_v50 = vsel %vm341_vm0, %v342_v42, %v343_v43  ;;  %v330_v51 = vsel %vm327_vm1, %v328_v44, %v329_v45  ;;  %v385_v52 = vrot.slane %v1041_v39, 5  ;;  %v384_v53 = vrot.slane %v1039_v38, 5 }
 0x129   : > { %v317_v54 = vpop.f32.mrb[2].mxu1  ;;  %347 = vrot.lane.b32.xlu1 %v344_v50, %s753_s21  ;;  %333 = vrot.lane.b32.xlu0 %v330_v51, %s754_s29  ;;  %v358_v55 = vsel %vm355_vm2, %v356_v46, %v357_v47  ;;  %v372_v56 = vsel %vm369_vm3, %v370_v48, %v371_v49  ;;  %v399_v57 = vrot.slane %v1041_v39, 6  ;;  %v398_v58 = vrot.slane %v1039_v38, 6 }
 0x12a   : > { %v1062_v59 = vpop.f32.mrb[3].mxu1  ;;  %v345_v60 = vrot.slane %v317_v54, 2  ;;  %v359_v61 = vrot.slane %v317_v54, 3  ;;  %v373_v62 = vrot.slane %v317_v54, 4  ;;  %v331_v63 = vrot.slane %v317_v54, 1 }
 0x12b   : > { %v387_v0 = vrot.slane %v317_v54, 5  ;;  %v386_v1 = vsel %vm383_vm4, %v384_v53, %v385_v52  ;;  %v401_v2 = vrot.slane %v317_v54, 6  ;;  %v400_v3 = vsel %vm397_vm5, %v398_v58, %v399_v57 }
 0x12c   : > { %v346_v4 = vsel %vm341_vm0, %v343_v43, %v345_v60  ;;  %v360_v5 = vsel %vm355_vm2, %v357_v47, %v359_v61  ;;  %v374_v6 = vsel %vm369_vm3, %v371_v49, %v373_v62  ;;  %v332_v7 = vsel %vm327_vm1, %v329_v45, %v331_v63 }
 0x12d   : > { %349 = vrot.lane.b32.xlu1 %v346_v4, %s753_s21  ;;  %361 = vrot.lane.b32.xlu0 %v358_v55, %s755_s30  ;;  %v388_v8 = vsel %vm383_vm4, %v385_v52, %v387_v0  ;;  %v402_v9 = vsel %vm397_vm5, %v399_v57, %v401_v2  ;;  %v413_v10 = vrot.slane %v1041_v39, 7  ;;  %v415_v11 = vrot.slane %v317_v54, 7  ;;  %s695_s21 = scalar_lea.vmem %s694_s28, 512 }
 0x12e   : > { %v412_v12 = vrot.slane %v1039_v38, 7  ;;  %p697_p1 = scmp.lt.s32.totalorder %s695_s21, %s689_s2 }
 0x12f   : > { %v416_v13 = vsel %vm411_vm6, %v413_v10, %v415_v11 }
 0x130   : > { %v414_v14 = vsel %vm411_vm6, %v412_v12, %v413_v10  ;;  %p698_p2 = por %p697_p1, %p696_p0 }
 0x131   : > { %363 = vrot.lane.b32.xlu1 %v360_v5, %s755_s30  ;;  %375 = vrot.lane.b32.xlu0 %v372_v56, %s756_s4 }
 0x132   : > { %p699_p3 = pnand %p698_p2, %p692_p13 }
 0x135   : > { %377 = vrot.lane.b32.xlu1 %v374_v6, %s756_s4  ;;  %335 = vrot.lane.b32.xlu0 %v332_v7, %s754_s29 }
 0x139   : > { %391 = vrot.lane.b32.xlu1 %v388_v8, %s757_s5  ;;  %389 = vrot.lane.b32.xlu0 %v386_v1, %s757_s5 }
 0x13d   : > { %405 = vrot.lane.b32.xlu1 %v402_v9, %s758_s6  ;;  %403 = vrot.lane.b32.xlu0 %v400_v3, %s758_s6 }
 0x141   : > { %419 = vrot.lane.b32.xlu1 %v416_v13, %s759_s7  ;;  %417 = vrot.lane.b32.xlu0 %v414_v14, %s759_s7 }
 0x19b   : > { %v348_v15 = vpop.permute.xlu1 %347  ;;  %v334_v16 = vpop.permute.xlu0 %333 }
 0x19c   : > { %v339_v21 = vadd.f32 %v334_v16, %v1039_v38 }
 0x19e   : > { %v353_v24 = vadd.f32 %v348_v15, %v339_v21 }
 0x19f   : > { %v350_v17 = vpop.permute.xlu1 %349  ;;  %v362_v18 = vpop.permute.xlu0 %361 }
 0x1a0   : > { %v367_v29 = vadd.f32 %v362_v18, %v353_v24 }
 0x1a3   : > { %v364_v19 = vpop.permute.xlu1 %363  ;;  %v376_v20 = vpop.permute.xlu0 %375 }
 0x1a4   : > { %v381_v31 = vadd.f32 %v376_v20, %v367_v29 }
 0x1a7   : > { %v378_v22 = vpop.permute.xlu1 %377  ;;  %v336_v23 = vpop.permute.xlu0 %335 }
 0x1a8   : > { %v340_v25 = vadd.f32 %v336_v23, %v1041_v39  ;;  %v428_v39 = vstv %s427_s8 }
 0x1aa   : > { %v354_v26 = vadd.f32 %v350_v17, %v340_v25 }
 0x1ab   : > { %v392_v27 = vpop.permute.xlu1 %391  ;;  %v390_v28 = vpop.permute.xlu0 %389 }
 0x1ac   : > { %v368_v30 = vadd.f32 %v364_v19, %v354_v26  ;;  %v395_v36 = vadd.f32 %v390_v28, %v381_v31 }
 0x1ae   : > { %v382_v32 = vadd.f32 %v378_v22, %v368_v30 }
 0x1af   : > { %v406_v33 = vpop.permute.xlu1 %405  ;;  %v404_v34 = vpop.permute.xlu0 %403 }
 0x1b0   : > { %v396_v35 = vadd.f32 %v392_v27, %v382_v32  ;;  %v409_v38 = vadd.f32 %v404_v34, %v395_v36 }
 0x1b2   : > { %v410_v37 = vadd.f32 %v406_v33, %v396_v35 }
 0x1b3   : > { %v420_v40 = vpop.permute.xlu1 %419  ;;  %v418_v42 = vpop.permute.xlu0 %417 }
 0x1b4   : > { %v424_v43 = vadd.f32 %v420_v40, %v410_v37  ;;  %v423_v44 = vadd.f32 %v418_v42, %v409_v38 }
 0x1b6   : > { %v426_v45 = vadd.f32 %v424_v43, %v1062_v59  ;;  %v425_v46 = vadd.f32 %v423_v44, %v1043_v41 }
 0x1b8   : > { %v430_v47 = vadd.f32 %v428_v39, %v426_v45  ;;  %v429_v48 = vadd.f32 %v428_v39, %v425_v46 }
 0x1ba   : > { %v529_v49 = vmul.f32 -1.442695, %v430_v47  ;;  %v528_v50 = vmul.f32 -1.442695, %v429_v48 }
 0x1bc   : > { %681 = vpow2.f32 %v529_v49 }
 0x1bd   : > { %683 = vpow2.f32 %v528_v50 }
 0x1c6   : > { %v682_v51 = vpop.eup %681 }
 0x1c7   : > { %v684_v52 = vpop.eup %683  ;;  %v438_v53 = vadd.f32 1.0, %v682_v51 }
 0x1c8   : > { %v437_v54 = vadd.f32 1.0, %v684_v52 }
 0x1c9   : > { %685 = vrcp.f32 %v438_v53 }
 0x1ca   : > { %687 = vrcp.f32 %v437_v54 }
 0x1d3   : > { %v686_v41 = vpop.eup %685 }
 0x1d4   : > { %v688_v55 = vpop.eup %687  ;;  %445 = vst.msk [vmem:[%s164_s12 + $0x8] sm:$0xff] %vm443_vm7, %v686_v41 }
 0x1d5   : > { %444 = vst.msk [vmem:[%s164_s12] sm:$0xff] %vm443_vm7, %v688_v55 }
 0x1d6   : > { %702 = shalt.err (!%p699_p3)
}
 0x1d7   : > { %s703_s29 = scalar_lea.hbm %s1086_s25, 256  ;;  %s707_s5 = scalar_lea.hbm %s1134_s3, 512 }
 0x1d8   : > { %p704_p4 = scmp.ne.s32.totalorder %s1086_s25, %s703_s29  ;;  %p708_p9 = scmp.lt.u32.totalorder %s1086_s25, %s1134_s3 }
 0x1d9   : > { %p709_p10 = scmp.lt.u32.totalorder %s707_s5, %s703_s29  ;;  %p711_p12 = scmp.lt.u32.totalorder %s703_s29, %s1086_s25 }
 0x1da   : > { %p705_p7 = pnand %p704_p4, %p824_p5 }
 0x1db   : > { %p710_p11 = por %p709_p10, %p708_p9 }
 0x1dc   : > { %p706_p8 = pneg %p705_p7 }
 0x1dd   : > { %p712_p13 = por %p711_p12, %p710_p11 }
 0x1df   : > { %p713_p0 = pnand %p712_p13, %p706_p8 }
 0x1e1   : > { %716 = shalt.err (!%p713_p0)
}
 0x1e2   : > { %s761_s8 = smov 128   ;;  %s762_s9 = smov 8  }
 0x1e3   : > { %633 = dma.vmem_to_hbm [thread:$0]  (%p824_p5), %s1088_s13, 256, %s1086_s25, %s1090_s26, %s761_s8, %s761_s8, %s762_s9  }
 0x1e4 PF: > { %p639_p1 = scmp.ge.s32.totalorder %s751_s17, 2  ;;  %s475_s10 = sand.u32 1, %s739_s14  }
 0x1e5   : > { %s476_s11 = scalar_lea.sflag [#allocation4], %s475_s10 }
 0x1e6   : > { %p636_p2 = pnand %p639_p1, %p828_p6 }
 0x1e8   : > { %734 = dma.done.wait (!%p636_p2), %s476_s11, 256  }
 0x1e9   : > { %736 = vsyncadd (!%p636_p2), %s476_s11, 4294967040  ;;  %p14_p3 = scmp.ge.s32.totalorder %s811_s19, 4   ;;  %s1137_s14 = smov %s743_s15 }
 0x1ea   : > { %s1138_s15 = smov %s747_s16  ;;  %s1139_s16 = smov %s822_s22 }
 0x1eb   : > { %s1140_s17 = smov %s811_s19  ;;  %16 = sbr.rel (!%p14_p3) target bundleno = 5 (0x5), region = 67 }
 0x1f2   :  { %481 = vsyncpa [#allocation4], 1 }
 0x1f3   :  { %483 = vsyncpa [#allocation4 + $0x1], 1 }

</bundles_post_ra>
